<compile_context>
chip_gen: v7x
topology: tpu7x:2x2x1
jax: 0.10.0
libtpu: 0.0.40
codegen_flags: <defaults>
</compile_context>

<pallas_src>
import functools

import jax
import jax.numpy as jnp
from jax.experimental import pallas as pl
from jax.experimental.pallas import tpu as pltpu

NUM_CLASS = 10  # NUM_CLASS is a free symbol in the reference file; pick 10.

# (in_features, out_features) for each Linear in the Sequential.
LAYER_DIMS = [(1500, 400), (400, 300), (300, 200), (200, 100), (100, 50),
              (50, NUM_CLASS)]

IN_FEATURES = LAYER_DIMS[0][0]          # 1500
LANE = 128


def _round_up(x, m):
    return ((x + m - 1) // m) * m


def sae_kernel(x_ref, w_ref, b_ref, out_ref):
    """One batch tile: y = x @ W_eff + b_eff (single MXU matmul, f32 acc)."""
    out_ref[...] = (
        jnp.dot(x_ref[...], w_ref[...], preferred_element_type=jnp.float32)
        + b_ref[...]
    ).astype(out_ref.dtype)


@jax.jit
def sae_forward(x, params):
    """params is a flat list [w1, b1, ..., w6, b6]; biases have shape (1, out).

    Collapses the linear chain into one affine map (valid because there are no
    nonlinearities and Dropout(0.05) is identity in eval mode), then runs a
    single batch-tiled Pallas matmul kernel.
    """
    # TODO(synk): training-mode dropout (pltpu.prng_seed + stateful_bernoulli)
    # not implemented; this forward matches model.eval() semantics.

    # ---- Collapse the chain outside the kernel: W_eff (1500, NUM_CLASS). ----
    w_eff = params[0]
    b_eff = params[1]
    for i in range(2, len(params), 2):
        w_eff = w_eff @ params[i]
        b_eff = b_eff @ params[i] + params[i + 1]

    k, n = w_eff.shape                      # (1500, NUM_CLASS)
    k_pad = _round_up(k, LANE)              # 1536
    n_pad = _round_up(n, LANE)              # 128

    w_p = jnp.zeros((k_pad, n_pad), jnp.float32).at[:k, :n].set(w_eff)
    b_p = jnp.zeros((1, n_pad), jnp.float32).at[:, :n].set(b_eff)

    # ---- Batch tiling (multiple of 8 sublanes; capped for v7x VMEM). -------
    batch = x.shape[0]
    tb = min(512, _round_up(batch, 8))
    b_pad = _round_up(batch, tb)
    x_p = jnp.zeros((b_pad, k_pad), jnp.float32).at[:batch, :k].set(
        x.astype(jnp.float32))

    grid = (b_pad // tb,)

    flops = 2 * b_pad * k_pad * n_pad
    bytes_accessed = 4 * (b_pad * k_pad + k_pad * n_pad + n_pad
                          + b_pad * n_pad)

    out = pl.pallas_call(
        sae_kernel,
        out_shape=jax.ShapeDtypeStruct((b_pad, n_pad), jnp.float32),
        grid=grid,
        in_specs=[
            pl.BlockSpec((tb, k_pad), lambda i: (i, 0)),       # x: streamed
            pl.BlockSpec((k_pad, n_pad), lambda i: (0, 0)),    # W_eff: resident
            pl.BlockSpec((1, n_pad), lambda i: (0, 0)),        # b_eff: resident
        ],
        out_specs=pl.BlockSpec((tb, n_pad), lambda i: (i, 0)),
        compiler_params=pltpu.CompilerParams(
            dimension_semantics=("parallel",),   # batch axis -> 2 TCs on v7x
            vmem_limit_bytes=64 << 20,
        ),
        cost_estimate=pl.CostEstimate(
            flops=flops, transcendentals=0, bytes_accessed=bytes_accessed),
    )(x_p, w_p, b_p)

    return out[:batch, :n]


def init_params(key):
    """Deterministic init mimicking nn.Linear default (U[-1/sqrt(in), 1/sqrt(in)]).

    Weights stored as (in, out); biases as (1, out).
    """
    params = []
    for (fan_in, fan_out) in LAYER_DIMS:
        key, kw, kb = jax.random.split(key, 3)
        bound = 1.0 / jnp.sqrt(jnp.float32(fan_in))
        w = jax.random.uniform(kw, (fan_in, fan_out), jnp.float32,
                               minval=-bound, maxval=bound)
        b = jax.random.uniform(kb, (1, fan_out), jnp.float32,
                               minval=-bound, maxval=bound)
        params += [w, b]
    return params


def sae_reference(x, params):
    """Pure-JAX reference: the original un-collapsed layer chain."""
    h = x
    for i in range(0, len(params), 2):
        h = h @ params[i] + params[i + 1]
    return h


if __name__ == "__main__":
    key = jax.random.PRNGKey(0)
    key, kx = jax.random.split(key)

    batch = 2
    x = jax.random.normal(kx, (batch, IN_FEATURES), jnp.float32)
    params = init_params(key)

    out = sae_forward(x, params)
    out = jax.block_until_ready(out)

    ref = sae_reference(x, params)
    assert out.shape == (batch, NUM_CLASS), out.shape
    assert jnp.allclose(out, ref, atol=1e-4, rtol=1e-4), (
        float(jnp.max(jnp.abs(out - ref))))

    print("KERNEL_OK")
</pallas_src>

<mosaic_0001>
module attributes {stable_mosaic.version = 11 : i64} {
  func.func @sae_kernel(%arg0: i32, %arg1: memref<8x1536xf32, #tpu.memory_space<vmem>>, %arg2: memref<1536x128xf32, #tpu.memory_space<vmem>>, %arg3: memref<1x128xf32, #tpu.memory_space<vmem>>, %arg4: memref<8x128xf32, #tpu.memory_space<vmem>>) attributes {dimension_semantics = [#tpu.dimension_semantics<parallel>], iteration_bounds = array<i64: 1>, scalar_prefetch = 0 : i64, scratch_operands = 0 : i64, tpu.core_type = #tpu.core_type<tc>, window_params = [{transform_indices = @transform_0, window_bounds = array<i64: 8, 1536>}, {pipeline_mode = #tpu.pipeline_mode<synchronous>, transform_indices = @transform_1, window_bounds = array<i64: 1536, 128>}, {pipeline_mode = #tpu.pipeline_mode<synchronous>, transform_indices = @transform_2, window_bounds = array<i64: 1, 128>}, {transform_indices = @transform_3, window_bounds = array<i64: 8, 128>}]} {
    %c0 = arith.constant 0 : index
    %c0_0 = arith.constant 0 : index
    %0 = vector.load %arg1[%c0, %c0_0] : memref<8x1536xf32, #tpu.memory_space<vmem>>, vector<8x1536xf32>
    %c0_1 = arith.constant 0 : index
    %c0_2 = arith.constant 0 : index
    %1 = vector.load %arg2[%c0_1, %c0_2] : memref<1536x128xf32, #tpu.memory_space<vmem>>, vector<1536x128xf32>
    %cst = arith.constant dense<0.000000e+00> : vector<8x128xf32>
    %2 = tpu.matmul %0, %1, %cst {dimension_numbers = #tpu.dot_dimension_numbers<[1], [0], [0], [1], [0, 0, 1, 1], [], []>} : vector<8x1536xf32>, vector<1536x128xf32>, vector<8x128xf32> -> vector<8x128xf32>
    %c0_3 = arith.constant 0 : index
    %c0_4 = arith.constant 0 : index
    %3 = vector.load %arg3[%c0_3, %c0_4] : memref<1x128xf32, #tpu.memory_space<vmem>>, vector<1x128xf32>
    %4 = vector.broadcast %3 : vector<1x128xf32> to vector<8x128xf32>
    %5 = arith.addf %2, %4 : vector<8x128xf32>
    %c0_5 = arith.constant 0 : index
    %c0_6 = arith.constant 0 : index
    %6 = vector.load %arg4[%c0_5, %c0_6] : memref<8x128xf32, #tpu.memory_space<vmem>>, vector<8x128xf32>
    tpu.vector_store %arg4[%c0_5, %c0_6], %5 {strides = array<i32>} : memref<8x128xf32, #tpu.memory_space<vmem>>, vector<8x128xf32>,
    return
  }
  func.func @transform_0(%arg0: i32) -> (i32, i32) {
    %c0_i32 = arith.constant 0 : i32
    %c0_i32_0 = arith.constant 0 : i32
    return %arg0, %c0_i32 : i32, i32
  }
  func.func @transform_1(%arg0: i32) -> (i32, i32) {
    %c0_i32 = arith.constant 0 : i32
    %c0_i32_0 = arith.constant 0 : i32
    %c0_i32_1 = arith.constant 0 : i32
    return %c0_i32, %c0_i32_0 : i32, i32
  }
  func.func @transform_2(%arg0: i32) -> (i32, i32) {
    %c0_i32 = arith.constant 0 : i32
    %c0_i32_0 = arith.constant 0 : i32
    %c0_i32_1 = arith.constant 0 : i32
    return %c0_i32, %c0_i32_0 : i32, i32
  }
  func.func @transform_3(%arg0: i32) -> (i32, i32) {
    %c0_i32 = arith.constant 0 : i32
    %c0_i32_0 = arith.constant 0 : i32
    return %arg0, %c0_i32 : i32, i32
  }
}

</mosaic_0001>

<bundles_post_ra>
// kernel: sae_forward.1
= control target key start
LH: loop header
LB: loop body
LE: loop exit
PB: predicated region body
PF: predicated region fallthrough
CT: control target
= control target key end

     0   :  { %8 = vsyncpa [#allocation3], 0  ;;  %s1277_s0 = inlined_call_operand.hbm [shape: f32[8,1536], index: 0, kind: input, shape index: {}]   ;;  %s1278_s1 = inlined_call_operand.hbm [shape: f32[1536,128], index: 1, kind: input, shape index: {}]   ;;  %s1279_s2 = inlined_call_operand.hbm [shape: f32[1,128], index: 2, kind: input, shape index: {}]   ;;  %s1280_s3 = inlined_call_operand.hbm [shape: f32[8,128], index: 3, kind: output, shape index: {}]  }
   0x1   :  { %9 = vsyncpa [#allocation6], 0 }
   0x2   :  { %10 = vsyncpa [#allocation4], 0  ;;  %s1203_s12 = smov [#allocation5]   ;;  %s1109_s16 = scalar_lea.hbm %s1278_s1, 24576 }
   0x3   :  { %s26_s13 = sshll.u32 %s1203_s12, 4  ;;  %p1110_p0 = scmp.ne.s32.totalorder %s1278_s1, %s1109_s16  ;;  %s27_s13 = int_to_ptr.vmem [resolvable:$true] %s26_s13 }
   0x4   :  { %p1113_p1 = scmp.lt.u32.totalorder %s1109_s16, %s1278_s1 }
   0x6   :  { %p1115_p2 = pnand %p1113_p1, %p1110_p0 }
   0x8   :  { %1118 = shalt.err (!%p1115_p2)
}
   0x9   :  { %s1119_s21 = scalar_lea.vmem %s27_s13, 24576  ;;  %p1124_p4 = scmp.lt.s32.totalorder %s27_s13, %s27_s13 }
   0xa   :  { %p1120_p3 = scmp.ne.s32.totalorder %s27_s13, %s1119_s21  ;;  %p1125_p5 = scmp.lt.s32.totalorder %s1119_s21, %s1119_s21 }
   0xc   :  { %p1126_p6 = por %p1125_p5, %p1124_p4 }
   0xe   :  { %p1127_p7 = pnand %p1126_p6, %p1120_p3 }
  0x10   :  { %1130 = shalt.err (!%p1127_p7)
}
  0x11   :  { %s1204_s22 = smov 128   ;;  %s1205_s23 = smov 8  }
  0x12   :  { %32 = dma.hbm_to_vmem [thread:$0]  %s1278_s1, 24576, %s27_s13, [#allocation6], %s1204_s22, %s1204_s22, %s1205_s23  }
  0x13   :  { %s1206_s26 = smov [#allocation2]   ;;  %s1207_s28 = smov [#allocation7]  }
  0x14   :  { %s17_s27 = sshll.u32 %s1206_s26, 4  ;;  %s39_s29 = sshll.u32 %s1207_s28, 4  ;;  %s18_s27 = int_to_ptr.vmem [resolvable:$true] %s17_s27  ;;  %s40_s29 = int_to_ptr.vmem [resolvable:$true] %s39_s29 }
  0x15   :  { %s1131_s5 = scalar_lea.hbm %s1277_s0, 1536 }
  0x16   :  { %p1132_p8 = scmp.ne.s32.totalorder %s1277_s0, %s1131_s5  ;;  %p1135_p9 = scmp.lt.u32.totalorder %s1131_s5, %s1277_s0 }
  0x18   :  { %p1137_p10 = pnand %p1135_p9, %p1132_p8 }
  0x1a   :  { %1140 = shalt.err (!%p1137_p10)
}
  0x1b   :  { %s1141_s1 = scalar_lea.vmem %s18_s27, 1536  ;;  %p1146_p12 = scmp.lt.s32.totalorder %s18_s27, %s18_s27 }
  0x1c   :  { %p1142_p11 = scmp.ne.s32.totalorder %s18_s27, %s1141_s1  ;;  %p1147_p13 = scmp.lt.s32.totalorder %s1141_s1, %s1141_s1 }
  0x1e   :  { %p1148_p0 = por %p1147_p13, %p1146_p12 }
  0x20   :  { %p1149_p1 = pnand %p1148_p0, %p1142_p11 }
  0x22   :  { %1152 = shalt.err (!%p1149_p1)
}
  0x23   :  { %20 = dma.hbm_to_vmem [thread:$0]  %s1277_s0, 1536, %s18_s27, [#allocation3]  }
  0x24   :  { %s1153_s14 = scalar_lea.hbm %s1279_s2, 16 }
  0x25   :  { %p1154_p2 = scmp.ne.s32.totalorder %s1279_s2, %s1153_s14  ;;  %p1157_p3 = scmp.lt.u32.totalorder %s1153_s14, %s1279_s2 }
  0x27   :  { %p1159_p4 = pnand %p1157_p3, %p1154_p2 }
  0x29   :  { %1162 = shalt.err (!%p1159_p4)
}
  0x2a   :  { %s1163_s19 = scalar_lea.vmem %s40_s29, 16  ;;  %s1167_s20 = scalar_lea.vmem %s40_s29, 32 }
  0x2b   :  { %p1164_p5 = scmp.ne.s32.totalorder %s40_s29, %s1163_s19  ;;  %p1168_p6 = scmp.lt.s32.totalorder %s40_s29, %s40_s29 }
  0x2c   :  { %p1169_p7 = scmp.lt.s32.totalorder %s1167_s20, %s1163_s19 }
  0x2e   :  { %p1170_p8 = por %p1169_p7, %p1168_p6 }
  0x30   :  { %p1171_p9 = pnand %p1170_p8, %p1164_p5 }
  0x32   :  { %1174 = shalt.err (!%p1171_p9)
}
  0x33   :  { %42 = dma.hbm_to_vmem [thread:$0]  %s1279_s2, 16, %s40_s29, [#allocation6]  }
  0x34   :  { %1197 = dma.done.wait [#allocation3], 1536  }
  0x35   :  { %1198 = vsyncadd [#allocation3], 4294965760 }
  0x36   :  { %1199 = dma.done.wait [#allocation6], 24592  }
  0x37   :  { %1200 = vsyncadd [#allocation6], 4294942704  ;;  %v80_v0 = vld [vmem:[#allocation5 + $0x80] sm:$0xff]  ;;  %v81_v1 = vld [vmem:[#allocation5 + $0x88] sm:$0xff]  ;;  %s1208_s2 = smov [#allocation8]  }
  0x38   :  { %v64_v2 = vld [vmem:[#allocation5] sm:$0xff]  ;;  %v911_v3 = vpack.c.bf16 %v81_v1, %v80_v0  ;;  %v65_v4 = vld [vmem:[#allocation5 + $0x8] sm:$0xff]  ;;  %v82_v11 = vld [vmem:[#allocation5 + $0x90] sm:$0xff]  ;;  %s690_s22 = sshll.u32 %s1208_s2, 4  ;;  %s691_s22 = int_to_ptr.vmem [resolvable:$true] %s690_s22 }
  0x39   :  { %v112_v5 = vld [vmem:[#allocation5 + $0x180] sm:$0xff]  ;;  %v113_v6 = vld [vmem:[#allocation5 + $0x188] sm:$0xff]  ;;  %v913_v7 = vpack.c.bf16 %v65_v4, %v64_v2  ;;  %v83_v13 = vld [vmem:[#allocation5 + $0x98] sm:$0xff]  ;;  %s1175_s23 = scalar_lea.vmem %s691_s22, 128  ;;  %p1180_p11 = scmp.lt.s32.totalorder %s691_s22, %s691_s22 }
  0x3a   :  { %v943_v8 = vpack.c.bf16 %v113_v6, %v112_v5  ;;  %v96_v9 = vld [vmem:[#allocation5 + $0x100] sm:$0xff]  ;;  %v97_v10 = vld [vmem:[#allocation5 + $0x108] sm:$0xff]  ;;  %912 = vmatprep.subr.bf16.mxu0 %v911_v3  ;;  %v66_v14 = vld [vmem:[#allocation5 + $0x10] sm:$0xff]  ;;  %v915_v16 = vpack.c.bf16 %v83_v13, %v82_v11  ;;  %p1176_p10 = scmp.ne.s32.totalorder %s691_s22, %s1175_s23  ;;  %p1181_p12 = scmp.lt.s32.totalorder %s1175_s23, %s1175_s23 }
  0x3b   :  { %v945_v12 = vpack.c.bf16 %v97_v10, %v96_v9  ;;  %v67_v15 = vld [vmem:[#allocation5 + $0x18] sm:$0xff]  ;;  %914 = vmatpush3.bf16.msra.mxu0 %v913_v7  ;;  %v114_v18 = vld [vmem:[#allocation5 + $0x190] sm:$0xff]  ;;  %v84_v23 = vld [vmem:[#allocation5 + $0xa0] sm:$0xff] }
  0x3c   :  { %944 = vmatprep.subr.bf16.mxu1 %v943_v8  ;;  %v917_v17 = vpack.c.bf16 %v67_v15, %v66_v14  ;;  %v115_v19 = vld [vmem:[#allocation5 + $0x198] sm:$0xff]  ;;  %v98_v20 = vld [vmem:[#allocation5 + $0x110] sm:$0xff]  ;;  %v85_v24 = vld [vmem:[#allocation5 + $0xa8] sm:$0xff]  ;;  %916 = vmatprep.subr.bf16.mxu0 %v915_v16  ;;  %p1182_p13 = por %p1181_p12, %p1180_p11 }
  0x3d   :  { %946 = vmatpush3.bf16.msra.mxu1 %v945_v12  ;;  %v947_v21 = vpack.c.bf16 %v115_v19, %v114_v18  ;;  %v99_v22 = vld [vmem:[#allocation5 + $0x118] sm:$0xff]  ;;  %v919_v26 = vpack.c.bf16 %v85_v24, %v84_v23  ;;  %v68_v27 = vld [vmem:[#allocation5 + $0x20] sm:$0xff]  ;;  %v69_v28 = vld [vmem:[#allocation5 + $0x28] sm:$0xff] }
  0x3e   :  { %v949_v25 = vpack.c.bf16 %v99_v22, %v98_v20  ;;  %v116_v29 = vld [vmem:[#allocation5 + $0x1a0] sm:$0xff]  ;;  %v117_v30 = vld [vmem:[#allocation5 + $0x1a8] sm:$0xff]  ;;  %v921_v33 = vpack.c.bf16 %v69_v28, %v68_v27  ;;  %v86_v35 = vld [vmem:[#allocation5 + $0xb0] sm:$0xff]  ;;  %p1183_p0 = pnand %p1182_p13, %p1176_p10 }
  0x3f   :  { %948 = vmatprep.subr.bf16.mxu1 %v947_v21  ;;  %v100_v31 = vld [vmem:[#allocation5 + $0x120] sm:$0xff]  ;;  %v101_v32 = vld [vmem:[#allocation5 + $0x128] sm:$0xff]  ;;  %918 = vmatpush3.bf16.msra.mxu0 %v917_v17  ;;  %v951_v34 = vpack.c.bf16 %v117_v30, %v116_v29  ;;  %v87_v36 = vld [vmem:[#allocation5 + $0xb8] sm:$0xff] }
  0x40   :  { %v70_v37 = vld [vmem:[#allocation5 + $0x30] sm:$0xff]  ;;  %920 = vmatprep.subr.bf16.mxu0 %v919_v26  ;;  %v953_v38 = vpack.c.bf16 %v101_v32, %v100_v31  ;;  %v923_v39 = vpack.c.bf16 %v87_v36, %v86_v35  ;;  %v71_v40 = vld [vmem:[#allocation5 + $0x38] sm:$0xff]  ;;  %v88_v46 = vld [vmem:[#allocation5 + $0xc0] sm:$0xff] }
  0x41   :  { %950 = vmatpush3.bf16.msra.mxu1 %v949_v25  ;;  %v118_v41 = vld [vmem:[#allocation5 + $0x1b0] sm:$0xff]  ;;  %v119_v42 = vld [vmem:[#allocation5 + $0x1b8] sm:$0xff]  ;;  %v89_v47 = vld [vmem:[#allocation5 + $0xc8] sm:$0xff]  ;;  %v925_v48 = vpack.c.bf16 %v71_v40, %v70_v37 }
  0x42   :  { %952 = vmatprep.subr.bf16.mxu1 %v951_v34  ;;  %v955_v43 = vpack.c.bf16 %v119_v42, %v118_v41  ;;  %v102_v44 = vld [vmem:[#allocation5 + $0x130] sm:$0xff]  ;;  %v103_v45 = vld [vmem:[#allocation5 + $0x138] sm:$0xff]  ;;  %v120_v49 = vld [vmem:[#allocation5 + $0x1c0] sm:$0xff]  ;;  %v927_v52 = vpack.c.bf16 %v89_v47, %v88_v46 }
  0x43   :  { %922 = vmatpush3.bf16.msra.mxu0 %v921_v33  ;;  %v121_v50 = vld [vmem:[#allocation5 + $0x1c8] sm:$0xff]  ;;  %v957_v51 = vpack.c.bf16 %v103_v45, %v102_v44  ;;  %v72_v53 = vld [vmem:[#allocation5 + $0x40] sm:$0xff]  ;;  %v90_v58 = vld [vmem:[#allocation5 + $0xd0] sm:$0xff] }
  0x44   :  { %924 = vmatprep.subr.bf16.mxu0 %v923_v39  ;;  %v73_v54 = vld [vmem:[#allocation5 + $0x48] sm:$0xff]  ;;  %v104_v55 = vld [vmem:[#allocation5 + $0x140] sm:$0xff]  ;;  %v959_v56 = vpack.c.bf16 %v121_v50, %v120_v49  ;;  %v91_v59 = vld [vmem:[#allocation5 + $0xd8] sm:$0xff] }
  0x45   :  { %954 = vmatpush3.bf16.msra.mxu1 %v953_v38  ;;  %v105_v57 = vld [vmem:[#allocation5 + $0x148] sm:$0xff]  ;;  %v122_v60 = vld [vmem:[#allocation5 + $0x1d0] sm:$0xff]  ;;  %v123_v61 = vld [vmem:[#allocation5 + $0x1d8] sm:$0xff]  ;;  %v929_v62 = vpack.c.bf16 %v73_v54, %v72_v53  ;;  %v931_v0 = vpack.c.bf16 %v91_v59, %v90_v58 }
  0x46   :  { %956 = vmatprep.subr.bf16.mxu1 %v955_v43  ;;  %v961_v63 = vpack.c.bf16 %v105_v57, %v104_v55  ;;  %v74_v1 = vld [vmem:[#allocation5 + $0x50] sm:$0xff]  ;;  %v75_v2 = vld [vmem:[#allocation5 + $0x58] sm:$0xff]  ;;  %v963_v4 = vpack.c.bf16 %v123_v61, %v122_v60  ;;  %v92_v6 = vld [vmem:[#allocation5 + $0xe0] sm:$0xff] }
  0x47   :  { %926 = vmatpush3.bf16.msra.mxu0 %v925_v48  ;;  %v106_v3 = vld [vmem:[#allocation5 + $0x150] sm:$0xff]  ;;  %v107_v5 = vld [vmem:[#allocation5 + $0x158] sm:$0xff]  ;;  %v93_v7 = vld [vmem:[#allocation5 + $0xe8] sm:$0xff]  ;;  %v933_v10 = vpack.c.bf16 %v75_v2, %v74_v1 }
  0x48   :  { %928 = vmatprep.subr.bf16.mxu0 %v927_v52  ;;  %v124_v8 = vld [vmem:[#allocation5 + $0x1e0] sm:$0xff]  ;;  %v125_v9 = vld [vmem:[#allocation5 + $0x1e8] sm:$0xff]  ;;  %v965_v13 = vpack.c.bf16 %v107_v5, %v106_v3  ;;  %v935_v14 = vpack.c.bf16 %v93_v7, %v92_v6  ;;  %v94_v19 = vld [vmem:[#allocation5 + $0xf0] sm:$0xff] }
  0x49   :  { %958 = vmatpush3.bf16.msra.mxu1 %v957_v51  ;;  %v76_v11 = vld [vmem:[#allocation5 + $0x60] sm:$0xff]  ;;  %v77_v12 = vld [vmem:[#allocation5 + $0x68] sm:$0xff]  ;;  %v967_v18 = vpack.c.bf16 %v125_v9, %v124_v8  ;;  %v95_v20 = vld [vmem:[#allocation5 + $0xf8] sm:$0xff] }
  0x4a   :  { %960 = vmatprep.subr.bf16.mxu1 %v959_v56  ;;  %v108_v15 = vld [vmem:[#allocation5 + $0x160] sm:$0xff]  ;;  %v109_v16 = vld [vmem:[#allocation5 + $0x168] sm:$0xff]  ;;  %v55_v21 = vld [vmem:[#allocation2 + $0x18] sm:$0xff]  ;;  %v937_v24 = vpack.c.bf16 %v77_v12, %v76_v11  ;;  %v939_v26 = vpack.c.bf16 %v95_v20, %v94_v19 }
  0x4b   :  { %930 = vmatpush3.bf16.msra.mxu0 %v929_v62  ;;  %v53_v17 = vld [vmem:[#allocation2 + $0x8] sm:$0xff]  ;;  %v126_v22 = vld [vmem:[#allocation5 + $0x1f0] sm:$0xff]  ;;  %v127_v23 = vld [vmem:[#allocation5 + $0x1f8] sm:$0xff]  ;;  %397 = vmatprep.mubr.f32.mxu1 %v55_v21  ;;  %v969_v25 = vpack.c.bf16 %v109_v16, %v108_v15 }
  0x4c   :  { %932 = vmatprep.subr.bf16.mxu0 %v931_v0  ;;  %327 = vmatprep.mubr.f32.mxu0 %v53_v17  ;;  %v78_v27 = vld [vmem:[#allocation5 + $0x70] sm:$0xff]  ;;  %v79_v28 = vld [vmem:[#allocation5 + $0x78] sm:$0xff]  ;;  %v971_v30 = vpack.c.bf16 %v127_v23, %v126_v22  ;;  %v144_v32 = vld [vmem:[#allocation5 + $0x280] sm:$0xff] }
  0x4d   :  { %962 = vmatpush3.bf16.msra.mxu1 %v961_v63  ;;  %v110_v29 = vld [vmem:[#allocation5 + $0x170] sm:$0xff]  ;;  %v111_v31 = vld [vmem:[#allocation5 + $0x178] sm:$0xff]  ;;  %v145_v33 = vld [vmem:[#allocation5 + $0x288] sm:$0xff]  ;;  %v941_v36 = vpack.c.bf16 %v79_v28, %v78_v27 }
  0x4e   :  { %964 = vmatprep.subr.bf16.mxu1 %v963_v4  ;;  %v176_v34 = vld [vmem:[#allocation5 + $0x380] sm:$0xff]  ;;  %v177_v35 = vld [vmem:[#allocation5 + $0x388] sm:$0xff]  ;;  %v973_v37 = vpack.c.bf16 %v111_v31, %v110_v29  ;;  %v975_v38 = vpack.c.bf16 %v145_v33, %v144_v32  ;;  %v146_v44 = vld [vmem:[#allocation5 + $0x290] sm:$0xff] }
  0x4f   :  { %934 = vmatpush3.bf16.msra.mxu0 %v933_v10  ;;  %v128_v39 = vld [vmem:[#allocation5 + $0x200] sm:$0xff]  ;;  %v129_v40 = vld [vmem:[#allocation5 + $0x208] sm:$0xff]  ;;  %v1007_v42 = vpack.c.bf16 %v177_v35, %v176_v34  ;;  %v147_v45 = vld [vmem:[#allocation5 + $0x298] sm:$0xff] }
  0x50   :  { %936 = vmatprep.subr.bf16.mxu0 %v935_v14  ;;  %v160_v41 = vld [vmem:[#allocation5 + $0x300] sm:$0xff]  ;;  %v161_v43 = vld [vmem:[#allocation5 + $0x308] sm:$0xff]  ;;  %v178_v46 = vld [vmem:[#allocation5 + $0x390] sm:$0xff]  ;;  %v977_v49 = vpack.c.bf16 %v129_v40, %v128_v39  ;;  %v979_v52 = vpack.c.bf16 %v147_v45, %v146_v44 }
  0x51   :  { %966 = vmatpush3.bf16.msra.mxu1 %v965_v13  ;;  %v179_v47 = vld [vmem:[#allocation5 + $0x398] sm:$0xff]  ;;  %v52_v48 = vld [vmem:[#allocation2] sm:$0xff]  ;;  %v54_v50 = vld [vmem:[#allocation2 + $0x10] sm:$0xff]  ;;  %v1009_v51 = vpack.c.bf16 %v161_v43, %v160_v41 }
  0x52   :  { %968 = vmatprep.subr.bf16.mxu1 %v967_v18  ;;  %v130_v53 = vld [vmem:[#allocation5 + $0x210] sm:$0xff]  ;;  %v131_v54 = vld [vmem:[#allocation5 + $0x218] sm:$0xff]  ;;  %v1011_v56 = vpack.c.bf16 %v179_v47, %v178_v46  ;;  %v148_v58 = vld [vmem:[#allocation5 + $0x2a0] sm:$0xff] }
  0x53   :  { %938 = vmatpush3.bf16.msra.mxu0 %v937_v24  ;;  %v162_v55 = vld [vmem:[#allocation5 + $0x310] sm:$0xff]  ;;  %v163_v57 = vld [vmem:[#allocation5 + $0x318] sm:$0xff]  ;;  %v149_v59 = vld [vmem:[#allocation5 + $0x2a8] sm:$0xff]  ;;  %v981_v62 = vpack.c.bf16 %v131_v54, %v130_v53 }
  0x54   :  { %940 = vmatprep.subr.bf16.mxu0 %v939_v26  ;;  %v180_v60 = vld [vmem:[#allocation5 + $0x3a0] sm:$0xff]  ;;  %v181_v61 = vld [vmem:[#allocation5 + $0x3a8] sm:$0xff]  ;;  %v1013_v63 = vpack.c.bf16 %v163_v57, %v162_v55  ;;  %v983_v0 = vpack.c.bf16 %v149_v59, %v148_v58  ;;  %v150_v6 = vld [vmem:[#allocation5 + $0x2b0] sm:$0xff] }
  0x55   :  { %970 = vmatpush3.bf16.msra.mxu1 %v969_v25  ;;  %v132_v1 = vld [vmem:[#allocation5 + $0x220] sm:$0xff]  ;;  %v133_v2 = vld [vmem:[#allocation5 + $0x228] sm:$0xff]  ;;  %v1015_v4 = vpack.c.bf16 %v181_v61, %v180_v60  ;;  %v151_v7 = vld [vmem:[#allocation5 + $0x2b8] sm:$0xff] }
  0x56   :  { %972 = vmatprep.subr.bf16.mxu1 %v971_v30  ;;  %v164_v3 = vld [vmem:[#allocation5 + $0x320] sm:$0xff]  ;;  %v165_v5 = vld [vmem:[#allocation5 + $0x328] sm:$0xff]  ;;  %v182_v8 = vld [vmem:[#allocation5 + $0x3b0] sm:$0xff]  ;;  %v985_v10 = vpack.c.bf16 %v133_v2, %v132_v1  ;;  %v987_v12 = vpack.c.bf16 %v151_v7, %v150_v6 }
  0x57   :  { %942 = vmatpush3.bf16.msra.mxu0 %v941_v36  ;;  %v183_v9 = vld [vmem:[#allocation5 + $0x3b8] sm:$0xff]  ;;  %v1017_v11 = vpack.c.bf16 %v165_v5, %v164_v3  ;;  %v134_v13 = vld [vmem:[#allocation5 + $0x230] sm:$0xff]  ;;  %v152_v18 = vld [vmem:[#allocation5 + $0x2c0] sm:$0xff] }
  0x58   :  { %976 = vmatprep.subr.bf16.mxu0 %v975_v38  ;;  %v135_v14 = vld [vmem:[#allocation5 + $0x238] sm:$0xff]  ;;  %v166_v15 = vld [vmem:[#allocation5 + $0x330] sm:$0xff]  ;;  %v1019_v16 = vpack.c.bf16 %v183_v9, %v182_v8  ;;  %v153_v19 = vld [vmem:[#allocation5 + $0x2c8] sm:$0xff] }
  0x59   :  { %974 = vmatpush3.bf16.msra.mxu1 %v973_v37  ;;  %v167_v17 = vld [vmem:[#allocation5 + $0x338] sm:$0xff]  ;;  %v184_v20 = vld [vmem:[#allocation5 + $0x3c0] sm:$0xff]  ;;  %v185_v21 = vld [vmem:[#allocation5 + $0x3c8] sm:$0xff]  ;;  %v989_v22 = vpack.c.bf16 %v135_v14, %v134_v13  ;;  %v991_v26 = vpack.c.bf16 %v153_v19, %v152_v18 }
  0x5a   :  { %1008 = vmatprep.subr.bf16.mxu1 %v1007_v42  ;;  %328 = vmatmul.mubr.f32.vlgmr.msra.gmra.mrb[0].mxu0 %v52_v48  ;;  %v136_v23 = vld [vmem:[#allocation5 + $0x240] sm:$0xff]  ;;  %v57_v24 = vld [vmem:[#allocation2 + $0x28] sm:$0xff]  ;;  %v1021_v25 = vpack.c.bf16 %v167_v17, %v166_v15  ;;  %v59_v29 = vld [vmem:[#allocation2 + $0x38] sm:$0xff]  ;;  %v1023_v30 = vpack.c.bf16 %v185_v21, %v184_v20 }
  0x5b   :  { %978 = vmatpush3.bf16.msra.mxu0 %v977_v49  ;;  %v137_v27 = vld [vmem:[#allocation5 + $0x248] sm:$0xff]  ;;  %v168_v28 = vld [vmem:[#allocation5 + $0x340] sm:$0xff]  ;;  %v154_v32 = vld [vmem:[#allocation5 + $0x2d0] sm:$0xff]  ;;  %467 = vmatprep.mubr.f32.mxu0 %v57_v24 }
  0x5c   :  { %398 = vmatmul.mubr.f32.vlgmr.msra.gmra.mrb[0].mxu1 %v54_v50  ;;  %980 = vmatprep.subr.bf16.mxu0 %v979_v52  ;;  %v169_v31 = vld [vmem:[#allocation5 + $0x348] sm:$0xff]  ;;  %v155_v33 = vld [vmem:[#allocation5 + $0x2d8] sm:$0xff]  ;;  %v186_v34 = vld [vmem:[#allocation5 + $0x3d0] sm:$0xff]  ;;  %v993_v36 = vpack.c.bf16 %v137_v27, %v136_v23 }
  0x5d   :  { %1010 = vmatpush3.bf16.msra.mxu1 %v1009_v51  ;;  %v187_v35 = vld [vmem:[#allocation5 + $0x3d8] sm:$0xff]  ;;  %537 = vmatprep.mubr.f32.mxu1 %v59_v29  ;;  %v1025_v37 = vpack.c.bf16 %v169_v31, %v168_v28  ;;  %v995_v38 = vpack.c.bf16 %v155_v33, %v154_v32  ;;  %v138_v39 = vld [vmem:[#allocation5 + $0x250] sm:$0xff]  ;;  %v156_v44 = vld [vmem:[#allocation5 + $0x2e0] sm:$0xff] }
  0x5e   :  { %1012 = vmatprep.subr.bf16.mxu1 %v1011_v56  ;;  %v139_v40 = vld [vmem:[#allocation5 + $0x258] sm:$0xff]  ;;  %v170_v41 = vld [vmem:[#allocation5 + $0x350] sm:$0xff]  ;;  %v1027_v42 = vpack.c.bf16 %v187_v35, %v186_v34  ;;  %v157_v45 = vld [vmem:[#allocation5 + $0x2e8] sm:$0xff] }
  0x5f   :  { %982 = vmatpush3.bf16.msra.mxu0 %v981_v62  ;;  %v171_v43 = vld [vmem:[#allocation5 + $0x358] sm:$0xff]  ;;  %v188_v46 = vld [vmem:[#allocation5 + $0x3e0] sm:$0xff]  ;;  %v189_v47 = vld [vmem:[#allocation5 + $0x3e8] sm:$0xff]  ;;  %v997_v48 = vpack.c.bf16 %v139_v40, %v138_v39  ;;  %v999_v50 = vpack.c.bf16 %v157_v45, %v156_v44 }
  0x60   :  { %984 = vmatprep.subr.bf16.mxu0 %v983_v0  ;;  %v1029_v49 = vpack.c.bf16 %v171_v43, %v170_v41  ;;  %v140_v51 = vld [vmem:[#allocation5 + $0x260] sm:$0xff]  ;;  %v141_v52 = vld [vmem:[#allocation5 + $0x268] sm:$0xff]  ;;  %v1031_v54 = vpack.c.bf16 %v189_v47, %v188_v46  ;;  %v158_v56 = vld [vmem:[#allocation5 + $0x2f0] sm:$0xff] }
  0x61   :  { %1014 = vmatpush3.bf16.msra.mxu1 %v1013_v63  ;;  %v172_v53 = vld [vmem:[#allocation5 + $0x360] sm:$0xff]  ;;  %v173_v55 = vld [vmem:[#allocation5 + $0x368] sm:$0xff]  ;;  %v159_v57 = vld [vmem:[#allocation5 + $0x2f8] sm:$0xff]  ;;  %v1001_v60 = vpack.c.bf16 %v141_v52, %v140_v51 }
  0x62   :  { %1016 = vmatprep.subr.bf16.mxu1 %v1015_v4  ;;  %v190_v58 = vld [vmem:[#allocation5 + $0x3f0] sm:$0xff]  ;;  %v191_v59 = vld [vmem:[#allocation5 + $0x3f8] sm:$0xff]  ;;  %v1033_v61 = vpack.c.bf16 %v173_v55, %v172_v53  ;;  %v1003_v62 = vpack.c.bf16 %v159_v57, %v158_v56  ;;  %v208_v4 = vld [vmem:[#allocation5 + $0x480] sm:$0xff] }
  0x63   :  { %986 = vmatpush3.bf16.msra.mxu0 %v985_v10  ;;  %v142_v63 = vld [vmem:[#allocation5 + $0x270] sm:$0xff]  ;;  %v143_v0 = vld [vmem:[#allocation5 + $0x278] sm:$0xff]  ;;  %v1035_v2 = vpack.c.bf16 %v191_v59, %v190_v58  ;;  %v209_v5 = vld [vmem:[#allocation5 + $0x488] sm:$0xff] }
  0x64   :  { %988 = vmatprep.subr.bf16.mxu0 %v987_v12  ;;  %v174_v1 = vld [vmem:[#allocation5 + $0x370] sm:$0xff]  ;;  %v175_v3 = vld [vmem:[#allocation5 + $0x378] sm:$0xff]  ;;  %v240_v6 = vld [vmem:[#allocation5 + $0x580] sm:$0xff]  ;;  %v1005_v8 = vpack.c.bf16 %v143_v0, %v142_v63  ;;  %v1039_v10 = vpack.c.bf16 %v209_v5, %v208_v4 }
  0x65   :  { %1018 = vmatpush3.bf16.msra.mxu1 %v1017_v11  ;;  %v241_v7 = vld [vmem:[#allocation5 + $0x588] sm:$0xff]  ;;  %v1037_v9 = vpack.c.bf16 %v175_v3, %v174_v1  ;;  %v192_v11 = vld [vmem:[#allocation5 + $0x400] sm:$0xff]  ;;  %v211_v17 = vld [vmem:[#allocation5 + $0x498] sm:$0xff] }
  0x66   :  { %1020 = vmatprep.subr.bf16.mxu1 %v1019_v16  ;;  %v193_v12 = vld [vmem:[#allocation5 + $0x408] sm:$0xff]  ;;  %v224_v13 = vld [vmem:[#allocation5 + $0x500] sm:$0xff]  ;;  %v1071_v14 = vpack.c.bf16 %v241_v7, %v240_v6  ;;  %v210_v16 = vld [vmem:[#allocation5 + $0x490] sm:$0xff] }
  0x67   :  { %990 = vmatpush3.bf16.msra.mxu0 %v989_v22  ;;  %v225_v15 = vld [vmem:[#allocation5 + $0x508] sm:$0xff]  ;;  %v242_v18 = vld [vmem:[#allocation5 + $0x590] sm:$0xff]  ;;  %v243_v19 = vld [vmem:[#allocation5 + $0x598] sm:$0xff]  ;;  %v1041_v21 = vpack.c.bf16 %v193_v12, %v192_v11  ;;  %v1043_v24 = vpack.c.bf16 %v211_v17, %v210_v16 }
  0x68   :  { %992 = vmatprep.subr.bf16.mxu0 %v991_v26  ;;  %v56_v20 = vld [vmem:[#allocation2 + $0x20] sm:$0xff]  ;;  %v58_v22 = vld [vmem:[#allocation2 + $0x30] sm:$0xff]  ;;  %v1073_v23 = vpack.c.bf16 %v225_v15, %v224_v13  ;;  %v195_v26 = vld [vmem:[#allocation5 + $0x418] sm:$0xff]  ;;  %v1075_v28 = vpack.c.bf16 %v243_v19, %v242_v18 }
  0x69   :  { %1022 = vmatpush3.bf16.msra.mxu1 %v1021_v25  ;;  %v194_v25 = vld [vmem:[#allocation5 + $0x410] sm:$0xff]  ;;  %v227_v29 = vld [vmem:[#allocation5 + $0x518] sm:$0xff]  ;;  %v213_v31 = vld [vmem:[#allocation5 + $0x4a8] sm:$0xff] }
  0x6a   :  { %1024 = vmatprep.subr.bf16.mxu1 %v1023_v30  ;;  %v226_v27 = vld [vmem:[#allocation5 + $0x510] sm:$0xff]  ;;  %v212_v30 = vld [vmem:[#allocation5 + $0x4a0] sm:$0xff]  ;;  %v245_v33 = vld [vmem:[#allocation5 + $0x5a8] sm:$0xff]  ;;  %v1045_v35 = vpack.c.bf16 %v195_v26, %v194_v25 }
  0x6b   :  { %994 = vmatpush3.bf16.msra.mxu0 %v993_v36  ;;  %v244_v32 = vld [vmem:[#allocation5 + $0x5a0] sm:$0xff]  ;;  %v61_v34 = vld [vmem:[#allocation2 + $0x48] sm:$0xff]  ;;  %v63_v36 = vld [vmem:[#allocation2 + $0x58] sm:$0xff] }
  0x6c   :  { %996 = vmatprep.subr.bf16.mxu0 %v995_v38  ;;  %v1047_v38 = vpack.c.bf16 %v213_v31, %v212_v30  ;;  %v196_v39 = vld [vmem:[#allocation5 + $0x420] sm:$0xff]  ;;  %v197_v40 = vld [vmem:[#allocation5 + $0x428] sm:$0xff]  ;;  %v214_v44 = vld [vmem:[#allocation5 + $0x4b0] sm:$0xff] }
  0x6d   :  { %1026 = vmatpush3.bf16.msra.mxu1 %v1025_v37  ;;  %v1077_v37 = vpack.c.bf16 %v227_v29, %v226_v27  ;;  %v228_v41 = vld [vmem:[#allocation5 + $0x520] sm:$0xff]  ;;  %v229_v43 = vld [vmem:[#allocation5 + $0x528] sm:$0xff]  ;;  %v215_v45 = vld [vmem:[#allocation5 + $0x4b8] sm:$0xff] }
  0x6e   :  { %1028 = vmatprep.subr.bf16.mxu1 %v1027_v42  ;;  %v1079_v42 = vpack.c.bf16 %v245_v33, %v244_v32  ;;  %v246_v46 = vld [vmem:[#allocation5 + $0x5b0] sm:$0xff]  ;;  %v247_v47 = vld [vmem:[#allocation5 + $0x5b8] sm:$0xff]  ;;  %v216_v56 = vld [vmem:[#allocation5 + $0x4c0] sm:$0xff] }
  0x6f   :  { %998 = vmatpush3.bf16.msra.mxu0 %v997_v48  ;;  %v1049_v48 = vpack.c.bf16 %v197_v40, %v196_v39  ;;  %v198_v51 = vld [vmem:[#allocation5 + $0x430] sm:$0xff]  ;;  %v199_v52 = vld [vmem:[#allocation5 + $0x438] sm:$0xff]  ;;  %v217_v57 = vld [vmem:[#allocation5 + $0x4c8] sm:$0xff] }
  0x70   :  { %1000 = vmatprep.subr.bf16.mxu0 %v999_v50  ;;  %v1051_v50 = vpack.c.bf16 %v215_v45, %v214_v44  ;;  %v230_v53 = vld [vmem:[#allocation5 + $0x530] sm:$0xff]  ;;  %v231_v55 = vld [vmem:[#allocation5 + $0x538] sm:$0xff]  ;;  %v248_v58 = vld [vmem:[#allocation5 + $0x5c0] sm:$0xff] }
  0x71   :  { %1030 = vmatpush3.bf16.msra.mxu1 %v1029_v49  ;;  %v1081_v49 = vpack.c.bf16 %v229_v43, %v228_v41  ;;  %v249_v59 = vld [vmem:[#allocation5 + $0x5c8] sm:$0xff]  ;;  %v200_v63 = vld [vmem:[#allocation5 + $0x440] sm:$0xff]  ;;  %v218_v4 = vld [vmem:[#allocation5 + $0x4d0] sm:$0xff] }
  0x72   :  { %1032 = vmatprep.subr.bf16.mxu1 %v1031_v54  ;;  %v1083_v54 = vpack.c.bf16 %v247_v47, %v246_v46  ;;  %v201_v0 = vld [vmem:[#allocation5 + $0x448] sm:$0xff]  ;;  %v232_v1 = vld [vmem:[#allocation5 + $0x540] sm:$0xff]  ;;  %v219_v5 = vld [vmem:[#allocation5 + $0x4d8] sm:$0xff] }
  0x73   :  { %1002 = vmatpush3.bf16.msra.mxu0 %v1001_v60  ;;  %v1053_v60 = vpack.c.bf16 %v199_v52, %v198_v51  ;;  %v233_v3 = vld [vmem:[#allocation5 + $0x548] sm:$0xff]  ;;  %v250_v6 = vld [vmem:[#allocation5 + $0x5d0] sm:$0xff]  ;;  %v251_v7 = vld [vmem:[#allocation5 + $0x5d8] sm:$0xff] }
  0x74   :  { %1004 = vmatprep.subr.bf16.mxu0 %v1003_v62  ;;  %v1055_v62 = vpack.c.bf16 %v217_v57, %v216_v56  ;;  %v202_v11 = vld [vmem:[#allocation5 + $0x450] sm:$0xff]  ;;  %v203_v12 = vld [vmem:[#allocation5 + $0x458] sm:$0xff]  ;;  %v220_v16 = vld [vmem:[#allocation5 + $0x4e0] sm:$0xff] }
  0x75   :  { %1034 = vmatpush3.bf16.msra.mxu1 %v1033_v61  ;;  %v1085_v61 = vpack.c.bf16 %v231_v55, %v230_v53  ;;  %v234_v13 = vld [vmem:[#allocation5 + $0x550] sm:$0xff]  ;;  %v235_v15 = vld [vmem:[#allocation5 + $0x558] sm:$0xff]  ;;  %v221_v17 = vld [vmem:[#allocation5 + $0x4e8] sm:$0xff] }
  0x76   :  { %1036 = vmatprep.subr.bf16.mxu1 %v1035_v2  ;;  %v1087_v2 = vpack.c.bf16 %v249_v59, %v248_v58  ;;  %v252_v18 = vld [vmem:[#allocation5 + $0x5e0] sm:$0xff]  ;;  %v253_v19 = vld [vmem:[#allocation5 + $0x5e8] sm:$0xff]  ;;  %v223_v29 = vld [vmem:[#allocation5 + $0x4f8] sm:$0xff] }
  0x77   :  { %1006 = vmatpush3.bf16.msra.mxu0 %v1005_v8  ;;  %v1057_v8 = vpack.c.bf16 %v201_v0, %v200_v63  ;;  %v236_v25 = vld [vmem:[#allocation5 + $0x560] sm:$0xff]  ;;  %v1095_v26 = vpack.c.bf16 %v253_v19, %v252_v18  ;;  %v237_v27 = vld [vmem:[#allocation5 + $0x568] sm:$0xff]  ;;  %v254_v30 = vld [vmem:[#allocation5 + $0x5f0] sm:$0xff] }
  0x78   :  { %1040 = vmatprep.subr.bf16.mxu0 %v1039_v10  ;;  %v1059_v10 = vpack.c.bf16 %v219_v5, %v218_v4  ;;  %v255_v31 = vld [vmem:[#allocation5 + $0x5f8] sm:$0xff]  ;;  %v1097_v33 = vpack.c.bf16 %v237_v27, %v236_v25  ;;  %v62_v43 = vld [vmem:[#allocation2 + $0x50] sm:$0xff]  ;;  %v700_v45 = vld [vmem:[#allocation7] ss:$0 sm:$0xff] }
  0x79   :  { %1038 = vmatpush3.bf16.msra.mxu1 %v1037_v9  ;;  %v1089_v9 = vpack.c.bf16 %v233_v3, %v232_v1  ;;  %v239_v39 = vld [vmem:[#allocation5 + $0x578] sm:$0xff] }
  0x7a   :  { %1072 = vmatprep.subr.bf16.mxu1 %v1071_v14  ;;  %468 = vmatmul.mubr.f32.vlgmr.msra.gmra.mrb[2].mxu0 %v56_v20  ;;  %v1091_v14 = vpack.c.bf16 %v251_v7, %v250_v6  ;;  %v1061_v20 = vpack.c.bf16 %v203_v12, %v202_v11 }
  0x7b   :  { %1042 = vmatpush3.bf16.msra.mxu0 %v1041_v21  ;;  %607 = vmatprep.mubr.f32.mxu0 %v61_v34  ;;  %v1093_v21 = vpack.c.bf16 %v235_v15, %v234_v13 }
  0x7c   :  { %538 = vmatmul.mubr.f32.vlgmr.msra.gmra.mrb[2].mxu1 %v58_v22  ;;  %1044 = vmatprep.subr.bf16.mxu0 %v1043_v24  ;;  %v1063_v22 = vpack.c.bf16 %v221_v17, %v220_v16  ;;  %v205_v24 = vld [vmem:[#allocation5 + $0x468] sm:$0xff] }
  0x7d   :  { %1074 = vmatpush3.bf16.msra.mxu1 %v1073_v23  ;;  %677 = vmatprep.mubr.f32.mxu1 %v63_v36  ;;  %v204_v23 = vld [vmem:[#allocation5 + $0x460] sm:$0xff]  ;;  %v207_v36 = vld [vmem:[#allocation5 + $0x478] sm:$0xff] }
  0x7e   :  { %1076 = vmatprep.subr.bf16.mxu1 %v1075_v28  ;;  %v222_v28 = vld [vmem:[#allocation5 + $0x4f0] sm:$0xff]  ;;  %v1065_v32 = vpack.c.bf16 %v205_v24, %v204_v23 }
  0x7f   :  { %1046 = vmatpush3.bf16.msra.mxu0 %v1045_v35  ;;  %v1067_v34 = vpack.c.bf16 %v223_v29, %v222_v28  ;;  %v206_v35 = vld [vmem:[#allocation5 + $0x470] sm:$0xff] }
  0x80   :  { %1048 = vmatprep.subr.bf16.mxu0 %v1047_v38  ;;  %v238_v38 = vld [vmem:[#allocation5 + $0x570] sm:$0xff]  ;;  %v1069_v40 = vpack.c.bf16 %v207_v36, %v206_v35 }
  0x81   :  { %1078 = vmatpush3.bf16.msra.mxu1 %v1077_v37  ;;  %v1099_v37 = vpack.c.bf16 %v255_v31, %v254_v30  ;;  %v1101_v41 = vpack.c.bf16 %v239_v39, %v238_v38 }
  0x82   :  { %1080 = vmatprep.subr.bf16.mxu1 %v1079_v42  ;;  %v60_v42 = vld [vmem:[#allocation2 + $0x40] sm:$0xff] }
  0x83   :  { %1050 = vmatpush3.bf16.msra.mxu0 %v1049_v48 }
  0x84   :  { %1052 = vmatprep.subr.bf16.mxu0 %v1051_v50 }
  0x85   :  { %1082 = vmatpush3.bf16.msra.mxu1 %v1081_v49 }
  0x86   :  { %1084 = vmatprep.subr.bf16.mxu1 %v1083_v54 }
  0x87   :  { %1054 = vmatpush3.bf16.msra.mxu0 %v1053_v60 }
  0x88   :  { %1056 = vmatprep.subr.bf16.mxu0 %v1055_v62 }
  0x89   :  { %1086 = vmatpush3.bf16.msra.mxu1 %v1085_v61 }
  0x8a   :  { %1088 = vmatprep.subr.bf16.mxu1 %v1087_v2 }
  0x8b   :  { %1058 = vmatpush3.bf16.msra.mxu0 %v1057_v8 }
  0x8c   :  { %1060 = vmatprep.subr.bf16.mxu0 %v1059_v10 }
  0x8d   :  { %1090 = vmatpush3.bf16.msra.mxu1 %v1089_v9 }
  0x8e   :  { %1092 = vmatprep.subr.bf16.mxu1 %v1091_v14 }
  0x8f   :  { %1062 = vmatpush3.bf16.msra.mxu0 %v1061_v20 }
  0x90   :  { %1064 = vmatprep.subr.bf16.mxu0 %v1063_v22 }
  0x91   :  { %1094 = vmatpush3.bf16.msra.mxu1 %v1093_v21 }
  0x92   :  { %1096 = vmatprep.subr.bf16.mxu1 %v1095_v26 }
  0x93   :  { %1066 = vmatpush3.bf16.msra.mxu0 %v1065_v32 }
  0x94   :  { %1068 = vmatprep.subr.bf16.mxu0 %v1067_v34 }
  0x95   :  { %1098 = vmatpush3.bf16.msra.mxu1 %v1097_v33 }
  0x96   :  { %1100 = vmatprep.subr.bf16.mxu1 %v1099_v37 }
  0x97   :  { %1070 = vmatpush3.bf16.msra.mxu0 %v1069_v40 }
  0x99   :  { %1102 = vmatpush3.bf16.msra.mxu1 %v1101_v41 }
  0x9a   :  { %608 = vmatmul.mubr.f32.vlgmr.msra.gmra.mrb[4].mxu0 %v60_v42 }
  0x9c   :  { %678 = vmatmul.mubr.f32.vlgmr.msra.gmra.mrb[4].mxu1 %v62_v43 }
 0x12d   :  { %v733_v44 = vpop.f32.mrb[0].mxu0 }
 0x12e   :  { %v734_v46 = vpop.f32.mrb[1].mxu0 }
 0x12f   :  { %v768_v47 = vpop.f32.mrb[0].mxu1  ;;  %v735_v48 = vadd.f32 %v734_v46, %v733_v44 }
 0x130   :  { %v769_v49 = vpop.f32.mrb[1].mxu1 }
 0x131   :  { %v770_v50 = vadd.f32 %v769_v49, %v768_v47  ;;  %v330_v51 = vadd.f32 %v735_v48, %v700_v45 }
 0x133   :  { %v400_v52 = vadd.f32 %v770_v50, %v330_v51 }
 0x14d   :  { %v803_v53 = vpop.f32.mrb[2].mxu0 }
 0x14e   :  { %v804_v54 = vpop.f32.mrb[3].mxu0 }
 0x14f   :  { %v838_v55 = vpop.f32.mrb[2].mxu1  ;;  %v805_v56 = vadd.f32 %v804_v54, %v803_v53 }
 0x150   :  { %v839_v57 = vpop.f32.mrb[3].mxu1 }
 0x151   :  { %v840_v58 = vadd.f32 %v839_v57, %v838_v55  ;;  %v470_v59 = vadd.f32 %v805_v56, %v400_v52 }
 0x153   :  { %v540_v60 = vadd.f32 %v840_v58, %v470_v59 }
 0x16d   :  { %v873_v61 = vpop.f32.mrb[4].mxu0 }
 0x16e   :  { %v874_v62 = vpop.f32.mrb[5].mxu0 }
 0x16f   :  { %v908_v63 = vpop.f32.mrb[4].mxu1  ;;  %v875_v0 = vadd.f32 %v874_v62, %v873_v61 }
 0x170   :  { %v909_v1 = vpop.f32.mrb[5].mxu1 }
 0x171   :  { %v910_v2 = vadd.f32 %v909_v1, %v908_v63  ;;  %v610_v3 = vadd.f32 %v875_v0, %v540_v60 }
 0x173   :  { %v680_v4 = vadd.f32 %v910_v2, %v610_v3 }
 0x175   :  { %683 = vst [vmem:[#allocation8] sm:$0xff] %v680_v4 }
 0x176   :  { %1186 = shalt.err (!%p1183_p0)
}
 0x177   :  { %s1187_s26 = scalar_lea.hbm %s1280_s3, 128 }
 0x178   :  { %p1188_p1 = scmp.ne.s32.totalorder %s1280_s3, %s1187_s26  ;;  %p1191_p2 = scmp.lt.u32.totalorder %s1187_s26, %s1280_s3 }
 0x17a   :  { %p1193_p3 = pnand %p1191_p2, %p1188_p1 }
 0x17c   :  { %1196 = shalt.err (!%p1193_p3)
}
 0x17d   :  { %693 = dma.vmem_to_hbm [thread:$0]  %s691_s22, 128, %s1280_s3, [#allocation4]  }
 0x17e   :  { %1201 = dma.done.wait [#allocation4], 128  }
 0x17f   :  { %1202 = vsyncadd [#allocation4], 4294967168 }
 0x180   :  { %697 = vsyncpa [#allocation3], 1 }
 0x181   :  { %698 = vsyncpa [#allocation6], 1 }
 0x182   :  { %699 = vsyncpa [#allocation4], 1 }

</bundles_post_ra>
